<compile_context>
chip_gen: v5e
topology: v5e:2x2
jax: 0.10.0
libtpu: 0.0.40
codegen_flags: <defaults>
</compile_context>

<pallas_src>
import functools
import math

import jax
import jax.numpy as jnp
from jax.experimental import pallas as pl
from jax.experimental.pallas import tpu as pltpu

LITS_NUM_CLASSES = 3  # TODO(synk): `lits_num_classes` undefined in source; LiTS-2017 has 3 classes.
_BN_EPS = 1e-5


# --------------------------------------------------------------------------------------
# small helpers
# --------------------------------------------------------------------------------------
def _round_up(x, m):
    return ((x + m - 1) // m) * m


def _apply_act(y, act):
    if act == "none":
        return y
    if act == "relu":
        return jnp.maximum(y, 0.0)
    if act == "sigmoid":
        return jax.nn.sigmoid(y)
    if act == "gelu":  # exact (erf) GELU, matching torch nn.GELU()
        return 0.5 * y * (1.0 + jax.lax.erf(y * 0.7071067811865476))
    raise ValueError(act)


# --------------------------------------------------------------------------------------
# Pallas kernel 1: tiled matmul, bf16 operands, f32 accumulation, fused bias+activation
# --------------------------------------------------------------------------------------
def _matmul_kernel(a_ref, b_ref, bias_ref, o_ref, acc_ref, *, act):
    k = pl.program_id(2)

    @pl.when(k == 0)
    def _():
        acc_ref[...] = jnp.zeros_like(acc_ref)

    acc_ref[...] += jnp.dot(a_ref[...], b_ref[...], preferred_element_type=jnp.float32)

    @pl.when(k == pl.num_programs(2) - 1)
    def _():
        o_ref[...] = _apply_act(acc_ref[...] + bias_ref[...], act)


def pallas_matmul(a, b, bias=None, act="none"):
    """a:(M,K) @ b:(K,N) + bias with fused activation.  bf16 operands, f32 accum/output."""
    M, K = a.shape
    K2, N = b.shape
    assert K == K2
    a = a.astype(jnp.bfloat16)
    b = b.astype(jnp.bfloat16)
    if bias is None:
        bias = jnp.zeros((N,), jnp.float32)
    bias = bias.astype(jnp.float32)

    tm = min(256, _round_up(M, 16))
    tn = min(256, _round_up(N, 128))
    tk = min(512, _round_up(K, 128))
    Mp, Kp, Np = _round_up(M, tm), _round_up(K, tk), _round_up(N, tn)

    a_p = jnp.pad(a, ((0, Mp - M), (0, Kp - K)))
    b_p = jnp.pad(b, ((0, Kp - K), (0, Np - N)))
    bias_p = jnp.pad(bias, ((0, Np - N),)).reshape(1, Np)

    grid = (Mp // tm, Np // tn, Kp // tk)
    out = pl.pallas_call(
        functools.partial(_matmul_kernel, act=act),
        out_shape=jax.ShapeDtypeStruct((Mp, Np), jnp.float32),
        grid_spec=pltpu.PrefetchScalarGridSpec(
            num_scalar_prefetch=0,
            grid=grid,
            in_specs=[
                pl.BlockSpec((tm, tk), lambda i, j, k: (i, k)),
                pl.BlockSpec((tk, tn), lambda i, j, k: (k, j)),
                pl.BlockSpec((1, tn), lambda i, j, k: (0, j)),
            ],
            out_specs=pl.BlockSpec((tm, tn), lambda i, j, k: (i, j)),
            scratch_shapes=[pltpu.VMEM((tm, tn), jnp.float32)],
        ),
        compiler_params=pltpu.CompilerParams(
            dimension_semantics=("parallel", "parallel", "arbitrary"),
            vmem_limit_bytes=32 * 1024 * 1024,  # tiles ~1-2 MiB: safe on v5e/v6e/v7x
        ),
    )(a_p, b_p, bias_p)
    return out[:M, :N]


# --------------------------------------------------------------------------------------
# Pallas kernel 2: LayerNorm over last dim (row-tiled, parallel grid)
# --------------------------------------------------------------------------------------
def _ln_kernel(x_ref, g_ref, b_ref, o_ref, *, eps):
    x = x_ref[...]
    mu = jnp.mean(x, axis=-1, keepdims=True)
    xc = x - mu
    var = jnp.mean(xc * xc, axis=-1, keepdims=True)
    o_ref[...] = xc * jax.lax.rsqrt(var + eps) * g_ref[...] + b_ref[...]


def layernorm(x, p):
    C = x.shape[-1]
    x2 = x.reshape(-1, C).astype(jnp.float32)
    M = x2.shape[0]
    rt = min(256, _round_up(M, 8))
    Mp = _round_up(M, rt)
    x2p = jnp.pad(x2, ((0, Mp - M), (0, 0)))
    y = pl.pallas_call(
        functools.partial(_ln_kernel, eps=p["eps"]),
        out_shape=jax.ShapeDtypeStruct((Mp, C), jnp.float32),
        grid=(Mp // rt,),
        in_specs=[pl.BlockSpec((rt, C), lambda i: (i, 0)),
                  pl.BlockSpec((1, C), lambda i: (0, 0)),
                  pl.BlockSpec((1, C), lambda i: (0, 0))],
        out_specs=pl.BlockSpec((rt, C), lambda i: (i, 0)),
        compiler_params=pltpu.CompilerParams(dimension_semantics=("parallel",)),
    )(x2p, p["g"].reshape(1, C), p["b"].reshape(1, C))
    return y[:M].reshape(x.shape)


# --------------------------------------------------------------------------------------
# Pallas kernel 3: per-channel affine (+activation) on NCHW, lane-dense (HW on lanes)
# --------------------------------------------------------------------------------------
def _affine_kernel(x_ref, s_ref, t_ref, o_ref, *, act):
    o_ref[...] = _apply_act(x_ref[...] * s_ref[...] + t_ref[...], act)


def channel_affine_nchw(x, scale, shift, act="none"):
    """y[b,c,h,w] = act(scale[c]*x + shift[c]) without any layout transpose:
    rows = B*C (sublanes, per-row scale/shift column), HW on the lane axis."""
    B, C, H, W = x.shape
    M, L = B * C, H * W
    x2 = x.reshape(M, L).astype(jnp.float32)
    lt = min(1024, _round_up(L, 128))
    Lp = _round_up(L, lt)
    rt = min(256, _round_up(M, 8))
    Mp = _round_up(M, rt)
    x2p = jnp.pad(x2, ((0, Mp - M), (0, Lp - L)))
    s_col = jnp.pad(jnp.tile(scale.astype(jnp.float32), B), (0, Mp - M)).reshape(Mp, 1)
    t_col = jnp.pad(jnp.tile(shift.astype(jnp.float32), B), (0, Mp - M)).reshape(Mp, 1)
    y = pl.pallas_call(
        functools.partial(_affine_kernel, act=act),
        out_shape=jax.ShapeDtypeStruct((Mp, Lp), jnp.float32),
        grid=(Mp // rt, Lp // lt),
        in_specs=[pl.BlockSpec((rt, lt), lambda i, j: (i, j)),
                  pl.BlockSpec((rt, 1), lambda i, j: (i, 0)),
                  pl.BlockSpec((rt, 1), lambda i, j: (i, 0))],
        out_specs=pl.BlockSpec((rt, lt), lambda i, j: (i, j)),
        compiler_params=pltpu.CompilerParams(dimension_semantics=("parallel", "parallel")),
    )(x2p, s_col, t_col)
    return y[:M, :L].reshape(B, C, H, W)


# --------------------------------------------------------------------------------------
# Pallas kernel 4: softmax over the last (W) dim of an NCHW tensor, lane-padded to 128
# --------------------------------------------------------------------------------------
def _softmax_kernel(x_ref, o_ref):
    x = x_ref[...]
    m = jnp.max(x, axis=-1, keepdims=True)
    e = jnp.exp(x - m)
    o_ref[...] = e * pl.reciprocal(jnp.sum(e, axis=-1, keepdims=True), approx=True)


def softmax_lastdim_nchw(x):
    B, C, H, W = x.shape
    x2 = x.reshape(-1, W).astype(jnp.float32)
    M = x2.shape[0]
    Wp = _round_up(W, 128)
    rt = min(512, _round_up(M, 8))
    Mp = _round_up(M, rt)
    # pad with a large negative value: padded lanes get ~0 probability, no NaNs
    x2p = jnp.pad(x2, ((0, Mp - M), (0, Wp - W)), constant_values=-1e30)
    y = pl.pallas_call(
        _softmax_kernel,
        out_shape=jax.ShapeDtypeStruct((Mp, Wp), jnp.float32),
        grid=(Mp // rt,),
        in_specs=[pl.BlockSpec((rt, Wp), lambda i: (i, 0))],
        out_specs=pl.BlockSpec((rt, Wp), lambda i: (i, 0)),
        compiler_params=pltpu.CompilerParams(dimension_semantics=("parallel",)),
    )(x2p)
    return y[:M, :W].reshape(B, C, H, W)


# --------------------------------------------------------------------------------------
# Pallas kernel 5: 3x3 depthwise conv (padding=1, stride=1), row-band tiled, fused act
# --------------------------------------------------------------------------------------
def _dw_kernel(xp_ref, w_ref, b_ref, o_ref, *, act):
    Ht, Wt = o_ref.shape[1], o_ref.shape[2]
    x = xp_ref[0]  # (ht+2, W+2, C)
    acc = jnp.zeros(o_ref.shape[1:], jnp.float32)
    for kh in range(3):
        for kw in range(3):
            acc = acc + x[kh:kh + Ht, kw:kw + Wt, :] * w_ref[kh, kw]
    o_ref[0] = _apply_act(acc + b_ref[...], act)


def depthwise_conv3x3(x, p, act="none"):
    """x: NCHW; p holds packed weights (3,3,1,C) and bias (1,C)."""
    B, C, H, W = x.shape
    xh = x.transpose(0, 2, 3, 1).astype(jnp.float32)
    xp = jnp.pad(xh, ((0, 0), (1, 1), (1, 1), (0, 0)))
    ht = 64 if (H > 64 and H % 64 == 0) else H
    nbands = H // ht
    if nbands == 1:
        bands = xp
    else:  # overlapping row bands with a 1-row halo (duplicates 2 rows per band)
        bands = jnp.stack([xp[:, t * ht:t * ht + ht + 2] for t in range(nbands)], axis=1)
        bands = bands.reshape(B * nbands, ht + 2, W + 2, C)
    out = pl.pallas_call(
        functools.partial(_dw_kernel, act=act),
        out_shape=jax.ShapeDtypeStruct((B * nbands, ht, W, C), jnp.float32),
        grid=(B * nbands,),
        in_specs=[
            pl.BlockSpec((1, ht + 2, W + 2, C), lambda i: (i, 0, 0, 0)),
            pl.BlockSpec((3, 3, 1, C), lambda i: (0, 0, 0, 0)),
            pl.BlockSpec((1, C), lambda i: (0, 0)),
        ],
        out_specs=pl.BlockSpec((1, ht, W, C), lambda i: (i, 0, 0, 0)),
        compiler_params=pltpu.CompilerParams(dimension_semantics=("parallel",)),
    )(bands, p["w"], p["b"])
    return out.reshape(B, H, W, C).transpose(0, 3, 1, 2)


# --------------------------------------------------------------------------------------
# Pallas kernel 6: multi-head attention core, lane-dense over the token (HW) axis.
# The attention "sequence" is the batch axis (length 2), so this is pure VPU/XLU work.
# --------------------------------------------------------------------------------------
def _mha_kernel(q_ref, k_ref, v_ref, o_ref, *, scale, s_len, heads):
    q = q_ref[...]   # (s_len*heads, Dh, nt)
    k = k_ref[...]
    v = v_ref[...]
    for i in range(s_len):
        qi = q[i * heads:(i + 1) * heads] * scale                       # (h, Dh, nt)
        s = [jnp.sum(qi * k[j * heads:(j + 1) * heads], axis=1, keepdims=True)
             for j in range(s_len)]                                     # (h, 1, nt)
        m = s[0]
        for j in range(1, s_len):
            m = jnp.maximum(m, s[j])
        e = [jnp.exp(sj - m) for sj in s]
        den = e[0]
        for j in range(1, s_len):
            den = den + e[j]
        inv = pl.reciprocal(den, approx=True)
        acc = (e[0] * inv) * v[0:heads]
        for j in range(1, s_len):
            acc = acc + (e[j] * inv) * v[j * heads:(j + 1) * heads]
        o_ref[i * heads:(i + 1) * heads] = acc


def mha_core(q, k, v, *, scale, s_len, heads):
    """q/k/v: (s_len*heads, Dh, N) float; tokens N tiled lane-dense (padded to 128)."""
    G, Dh, N = q.shape
    nt = min(256, _round_up(N, 128))
    Np = _round_up(N, nt)
    pad = ((0, 0), (0, 0), (0, Np - N))
    qp = jnp.pad(q.astype(jnp.float32), pad)
    kp = jnp.pad(k.astype(jnp.float32), pad)
    vp = jnp.pad(v.astype(jnp.float32), pad)
    spec = pl.BlockSpec((G, Dh, nt), lambda i: (0, 0, i))
    out = pl.pallas_call(
        functools.partial(_mha_kernel, scale=scale, s_len=s_len, heads=heads),
        out_shape=jax.ShapeDtypeStruct((G, Dh, Np), jnp.float32),
        grid=(Np // nt,),
        in_specs=[spec, spec, spec],
        out_specs=spec,
        compiler_params=pltpu.CompilerParams(dimension_semantics=("parallel",)),
    )(qp, kp, vp)
    return out[:, :, :N]


# --------------------------------------------------------------------------------------
# layer wrappers built on the Pallas kernels (weights arrive pre-packed)
# --------------------------------------------------------------------------------------
def linear(x, p, act="none"):
    shp = x.shape
    y = pallas_matmul(x.reshape(-1, shp[-1]), p["wm"], p["b"], act)
    return y.reshape(shp[:-1] + (p["wm"].shape[1],))


def conv2d(x, p, stride=1, padding=0, dilation=1, act="none"):
    """PyTorch-style conv on NCHW input; weight is a pre-packed (k*k*Cin, Cout) matrix."""
    B, Cin, H, W = x.shape
    k = p["k"]
    Cout = p["wm"].shape[1]
    xh = x.transpose(0, 2, 3, 1).astype(jnp.bfloat16)  # patches emitted in bf16
    if padding:
        xh = jnp.pad(xh, ((0, 0), (padding, padding), (padding, padding), (0, 0)))
    Ho = (H + 2 * padding - dilation * (k - 1) - 1) // stride + 1
    Wo = (W + 2 * padding - dilation * (k - 1) - 1) // stride + 1
    if k == 1 and stride == 1 and padding == 0:
        patches = xh.reshape(B * Ho * Wo, Cin)
    else:
        cols = []
        for kh in range(k):
            for kw in range(k):
                h0, w0 = kh * dilation, kw * dilation
                cols.append(xh[:, h0:h0 + (Ho - 1) * stride + 1:stride,
                               w0:w0 + (Wo - 1) * stride + 1:stride, :])
        patches = jnp.stack(cols, axis=3).reshape(B * Ho * Wo, k * k * Cin)
    y = pallas_matmul(patches, p["wm"], p["b"], act)
    return y.reshape(B, Ho, Wo, Cout).transpose(0, 3, 1, 2)


def conv_transpose2d(x, p):
    """ConvTranspose2d with kernel_size == stride == k, padding 0 (pre-packed weights)."""
    B, Cin, H, W = x.shape
    k, Cout = p["k"], p["cout"]
    x2 = x.transpose(0, 2, 3, 1).reshape(B * H * W, Cin)
    y = pallas_matmul(x2, p["wm"], p["b"])
    y = y.reshape(B, H, W, Cout, k, k).transpose(0, 3, 1, 4, 2, 5)
    return y.reshape(B, Cout, H * k, W * k)


def multihead_attention(p, query, key, value):
    """torch nn.MultiheadAttention with batch_first=False: inputs are (L, N, E)."""
    L, N, E = query.shape
    h = p["heads"]
    Dh = E // h
    q = linear(query, p["q"])
    k = linear(key, p["k"])
    v = linear(value, p["v"])

    def to_heads(t):  # (S, N, E) -> (S*h, Dh, N): tokens lane-dense
        s = t.shape[0]
        return t.reshape(s, -1, h, Dh).transpose(0, 2, 3, 1).reshape(s * h, Dh, -1)

    o = mha_core(to_heads(q), to_heads(k), to_heads(v),
                 scale=1.0 / math.sqrt(Dh), s_len=L, heads=h)
    o = o.reshape(L, h, Dh, N).transpose(0, 3, 1, 2).reshape(L, N, E)
    return linear(o, p["out"])


# --------------------------------------------------------------------------------------
# module forwards
# --------------------------------------------------------------------------------------
def modulator_pe(p, x):
    proj = conv2d(x, p["pj_conv"], stride=2, padding=1)
    gate = depthwise_conv3x3(proj, p["pos_conv"], act="sigmoid")
    pos = proj * gate
    B, C, H, W = pos.shape
    tokens = pos.reshape(B, C, H * W).transpose(0, 2, 1)
    return layernorm(tokens, p["ln"])


def modulator_forward(p, x):
    # res = layer_scale * BN(x): eval BN folded with layer_scale into one channel affine
    res = channel_affine_nchw(x, p["res_scale"], p["res_shift"])
    # PA: 1x1 conv with its BatchNorm folded in, fused sigmoid epilogue
    pa = x * conv2d(x, p["pa"], act="sigmoid")
    # CA: squeeze-excite
    B, C, H, W = x.shape
    y = jnp.mean(x, axis=(2, 3))  # adaptive avg pool (tiny reduction, plain JAX glue)
    y = linear(y, p["ca_fc1"], act="relu")
    y = linear(y, p["ca_fc2"], act="sigmoid")
    ca = x * y.reshape(B, C, 1, 1)
    pa_ca = softmax_lastdim_nchw(p["g1"] * pa + p["g2"] * ca)
    # SA: dilated convs (fused ReLU); each branch's trailing BN is folded into sa_out
    sa_outs = [conv2d(x, cp, stride=1, padding=r, dilation=r, act="relu")
               for cp, r in zip(p["sa_convs"], p["rates"])]
    sa = conv2d(jnp.concatenate(sa_outs, axis=1), p["sa_out"])
    out = pa_ca + p["g3"] * sa
    # output_conv with the shared BatchNorm and the (1,C,1,1) bias parameter folded in
    out = conv2d(out, p["out_conv"])
    return out + res


def e_mlp(p, x):
    b, hw, c = x.shape
    f = int(round(math.sqrt(hw)))
    h1 = linear(x, p["l1"], act="gelu")
    c2 = h1.shape[-1]
    xi = h1.reshape(b, f, f, c2).transpose(0, 3, 1, 2)
    xd = depthwise_conv3x3(xi, p["dw"])
    xpw = conv2d(xd, p["pw"])
    xo = xpw.reshape(b, c2, hw).transpose(0, 2, 1)
    return linear(xo, p["l2"])


def sma_forward(p, value, key, query):
    msa = multihead_attention(p["attn"], query, key, value)
    B, S, C = msa.shape
    f = int(round(math.sqrt(S)))
    m4 = msa.transpose(0, 2, 1).reshape(B, C, f, f)
    syn = modulator_forward(p["mod"], m4)
    return syn.reshape(B, C, S).transpose(0, 2, 1)


def smaformer_block(p, value, key, query, res):
    # fusion_gate=True everywhere in SMAFormer
    attention = sma_forward(p["sma"], query, key, value)
    q2 = res + p["ls1"] * layernorm(attention, p["norm1"])
    ff = e_mlp(p["mlp"], q2)
    return q2 + p["ls2"] * layernorm(ff, p["norm2"])


def enc_dec_block(p, x, res):
    for lp in p["layers"]:
        x = smaformer_block(lp, res, res, x, x)
    return p["ls"] * layernorm(x, p["norm"])


def residual_conv(p, x, stride, padding):
    y = channel_affine_nchw(x, p["pre_scale"], p["pre_shift"], act="relu")  # BN1 + ReLU
    y = conv2d(y, p["c1"], stride=stride, padding=padding, act="relu")      # conv + BN2 + ReLU
    y = conv2d(y, p["c2"], stride=1, padding=1)
    s = conv2d(x, p["cs"], stride=stride, padding=1)                        # conv + BNs (folded)
    return y + s


def smaformer_forward(P, x):
    # input layer (BN folded into first conv, ReLU fused)
    t = conv2d(x, P["in_c1"], padding=1, act="relu")
    t = conv2d(t, P["in_c2"], padding=1)
    skip = conv2d(x, P["in_skip"], padding=1)
    x1 = t + skip

    x2 = modulator_pe(P["pe1"], x1)
    e1 = enc_dec_block(P["enc1"], x2, x2)
    b, np_, c = e1.shape
    f = int(round(math.sqrt(np_)))
    x2b = e1.reshape(b, c, f, f)                      # raw .view, no permute (as in torch)
    x2b = residual_conv(P["rc1"], x2b, stride=2, padding=1)

    x3 = modulator_pe(P["pe2"], x2b)
    e2 = enc_dec_block(P["enc2"], x3, x3)
    b, np_, c = e2.shape
    # TODO(synk): literal torch code uses num_patch // filters[2] here, which only equals
    # sqrt(num_patch) for 512x512 inputs; the intended square reshape is used instead.
    f = int(round(math.sqrt(np_)))
    e2s = e2.reshape(b, c, f, f)                      # raw .view, no permute
    x3b = residual_conv(P["rc2"], e2s, stride=2, padding=1)

    x4 = modulator_pe(P["pe3"], x3b)
    e3 = enc_dec_block(P["enc3"], x4, x4)
    e4 = enc_dec_block(P["enc4"], e3, e3)

    # ---- Decoder ----
    x5 = enc_dec_block(P["dec1"], e4, e4)
    b, hw, c = x5.shape
    f = int(round(math.sqrt(hw)))
    x5s = x5.transpose(0, 2, 1).reshape(b, c, f, f)
    x6 = conv_transpose2d(x5s, P["ut1"])
    x6 = jnp.concatenate([x6, x3b], axis=1)
    b, c6, h6, w6 = x6.shape
    x6 = x6.reshape(b, c6, h6 * w6).transpose(0, 2, 1)

    b, np_, c = e3.shape
    f = int(round(math.sqrt(np_)))
    e3s = e3.reshape(b, c, f, f)                      # raw .view, no permute
    e3u = jax.image.resize(e3s, (b, c, 2 * f, 2 * f), method="bilinear")
    e3t = e3u.reshape(b, c, 4 * f * f).transpose(0, 2, 1)
    x6 = enc_dec_block(P["dec2"], x6, e3t)

    b, hw, c = x6.shape
    f = int(round(math.sqrt(hw)))
    x6s = x6.transpose(0, 2, 1).reshape(b, c, f, f)
    x7 = conv_transpose2d(x6s, P["ut2"])
    x7 = jnp.concatenate([x7, e2s], axis=1)
    x7 = conv_transpose2d(x7, P["ut3"])
    b, c, h, w = x7.shape
    x7 = x7.reshape(b, c, h * w).transpose(0, 2, 1)
    b, c, h, w = e2s.shape
    e2t = e2s.reshape(b, c, h * w).transpose(0, 2, 1)
    x7 = enc_dec_block(P["dec3"], x7, e2t)

    b, hw, c = x7.shape
    f = int(round(math.sqrt(hw)))
    x7s = x7.transpose(0, 2, 1).reshape(b, c, f, f)
    x8 = conv_transpose2d(x7s, P["ut4"])
    x8 = jnp.concatenate([x8, x2b], axis=1)
    x8 = conv_transpose2d(x8, P["ut5"])
    b, c, h, w = x8.shape
    x8 = x8.reshape(b, c, h * w).transpose(0, 2, 1)

    b1, hw1, c1 = e1.shape
    f1 = int(round(math.sqrt(hw1)))
    e1s = e1.transpose(0, 2, 1).reshape(b1, c1, f1, f1)
    e1a = conv_transpose2d(e1s, P["adjust"])
    b1, c1, h1, w1 = e1a.shape
    e1t = e1a.reshape(b1, c1, h1 * w1).transpose(0, 2, 1)
    x8 = enc_dec_block(P["dec4"], x8, e1t)

    b, hw, c = x8.shape
    f = int(round(math.sqrt(hw)))
    x8s = x8.transpose(0, 2, 1).reshape(b, c, f, f)
    x8u = conv_transpose2d(x8s, P["ut6"])
    out = conv2d(x8u, P["out1"])
    out = conv2d(out, P["out2"])
    return out


# --------------------------------------------------------------------------------------
# deterministic parameter construction with pre-packed (bf16, im2col) weights and
# exact eval-mode BatchNorm folding (running_mean=0, running_var=1)
# --------------------------------------------------------------------------------------
class ParamInit:
    def __init__(self, seed=0):
        self.key = jax.random.PRNGKey(seed)
        self.count = 0

    def _next(self):
        self.count += 1
        return jax.random.fold_in(self.key, self.count)

    def normal(self, shape, std=0.05):
        return std * jax.random.normal(self._next(), shape, dtype=jnp.float32)


def make_bn_raw(C):
    return {"g": jnp.ones((C,), jnp.float32), "b": jnp.zeros((C,), jnp.float32)}


def _bn_affine(bn):
    # eval-mode BatchNorm of a fresh module: running_mean=0, running_var=1
    return bn["g"] / jnp.sqrt(1.0 + _BN_EPS), bn["b"]


def make_ln(C, eps=1e-5):
    return {"g": jnp.ones((C,), jnp.float32), "b": jnp.zeros((C,), jnp.float32), "eps": eps}


def pack_conv(w, b=None, *, post_scale=None, post_shift=None,
              pre_scale=None, pre_shift=None, extra_bias=None):
    """Pack a torch-layout conv weight (Cout,Cin,kH,kW) into an im2col (k*k*Cin, Cout)
    bf16 matrix, optionally folding an eval BatchNorm before (1x1/pad-0 only) or after."""
    cout, cin, kh, kw = w.shape
    w = w.astype(jnp.float32)
    b = jnp.zeros((cout,), jnp.float32) if b is None else b.astype(jnp.float32)
    if pre_scale is not None:
        b = b + jnp.einsum("oikl,i->o", w, pre_shift)
        w = w * pre_scale[None, :, None, None]
    if post_scale is not None:
        w = w * post_scale[:, None, None, None]
        b = b * post_scale + post_shift
    if extra_bias is not None:
        b = b + extra_bias
    wm = jnp.transpose(w, (2, 3, 1, 0)).reshape(kh * kw * cin, cout)
    return {"wm": wm.astype(jnp.bfloat16), "b": b, "k": kh}


def pack_linear(w, b=None):
    cout, cin = w.shape
    b = jnp.zeros((cout,), jnp.float32) if b is None else b.astype(jnp.float32)
    return {"wm": jnp.transpose(w).astype(jnp.bfloat16), "b": b}


def pack_dw(w, b):
    C = w.shape[0]
    wk = jnp.transpose(w[:, 0], (1, 2, 0)).reshape(3, 3, 1, C).astype(jnp.float32)
    return {"w": wk, "b": b.reshape(1, C).astype(jnp.float32)}


def pack_convT(w, b):
    cin, cout, k, _ = w.shape
    wm = w.reshape(cin, cout * k * k).astype(jnp.bfloat16)
    b_rep = jnp.repeat(b.astype(jnp.float32), k * k)
    return {"wm": wm, "b": b_rep, "k": k, "cout": cout}


def make_mha(pi, E, heads):
    in_w = pi.normal((3 * E, E))
    in_b = jnp.zeros((3 * E,), jnp.float32)
    out_w = pi.normal((E, E))
    out_b = jnp.zeros((E,), jnp.float32)
    wq, wk, wv = jnp.split(in_w, 3, axis=0)
    bq, bk, bv = jnp.split(in_b, 3, axis=0)
    return {"q": pack_linear(wq, bq), "k": pack_linear(wk, bk), "v": pack_linear(wv, bv),
            "out": pack_linear(out_w, out_b), "heads": heads}


def make_modulator(pi, cin, cout):
    rates = [1, 6, 12, 18]
    norm = make_bn_raw(cout)                 # shared by res path and out_conv (as in torch)
    s_n, t_n = _bn_affine(norm)
    ls = 0.1 * jnp.ones((cout,), jnp.float32)            # layer_scale
    bias_param = jnp.zeros((cout,), jnp.float32)         # the (1,out,1,1) bias parameter

    pa_bn = make_bn_raw(cin)
    s_pa, t_pa = _bn_affine(pa_bn)

    sa_bns = [make_bn_raw(cout) for _ in rates]
    s_cat = jnp.concatenate([_bn_affine(bn)[0] for bn in sa_bns])
    t_cat = jnp.concatenate([_bn_affine(bn)[1] for bn in sa_bns])

    return {
        # synergistic-attention path (only used when cin == cout)
        "res_scale": ls * s_n, "res_shift": ls * t_n,
        "pa": pack_conv(pi.normal((cin, cin, 1, 1)), None,
                        post_scale=s_pa, post_shift=t_pa),
        "ca_fc1": pack_linear(pi.normal((cin // 16, cin))),
        "ca_fc2": pack_linear(pi.normal((cin, cin // 16))),
        "sa_convs": [pack_conv(pi.normal((cout, cin, 3, 3)), jnp.zeros((cout,), jnp.float32))
                     for _ in rates],
        "rates": rates,
        "sa_out": pack_conv(pi.normal((cout, 4 * cout, 1, 1)), jnp.zeros((cout,), jnp.float32),
                            pre_scale=s_cat, pre_shift=t_cat),
        "out_conv": pack_conv(pi.normal((cout, cin, 1, 1)), jnp.zeros((cout,), jnp.float32),
                              post_scale=s_n, post_shift=t_n, extra_bias=bias_param),
        "g1": 0.1, "g2": 0.1, "g3": 0.1,
        # PE path
        "pj_conv": pack_conv(pi.normal((cout, cin, 3, 3)), jnp.zeros((cout,), jnp.float32)),
        "pos_conv": pack_dw(pi.normal((cout, 1, 3, 3)), jnp.zeros((cout,), jnp.float32)),
        "ln": make_ln(cout, eps=1e-6),
    }


def make_emlp(pi, C, fe=2):
    hid = fe * C
    return {"l1": pack_linear(pi.normal((hid, C)), jnp.zeros((hid,), jnp.float32)),
            "dw": pack_dw(pi.normal((hid, 1, 3, 3)), jnp.zeros((hid,), jnp.float32)),
            "pw": pack_conv(pi.normal((hid, hid, 1, 1)), jnp.zeros((hid,), jnp.float32)),
            "l2": pack_linear(pi.normal((C, hid)), jnp.zeros((C,), jnp.float32))}


def make_block(pi, C, heads, fe):
    return {"norm1": make_ln(C), "norm2": make_ln(C),
            "sma": {"attn": make_mha(pi, C, heads), "mod": make_modulator(pi, C, C)},
            "mlp": make_emlp(pi, C, fe),
            "ls1": 0.1 * jnp.ones((1, C), jnp.float32),
            "ls2": 0.1 * jnp.ones((1, C), jnp.float32)}


def make_encdec(pi, C, heads, fe, nlayers=1):
    return {"layers": [make_block(pi, C, heads, fe) for _ in range(nlayers)],
            "norm": make_ln(C), "ls": 0.1 * jnp.ones((1, C), jnp.float32)}


def make_resconv(pi, cin, cout):
    s1, t1 = _bn_affine(make_bn_raw(cin))
    s2, t2 = _bn_affine(make_bn_raw(cout))
    ss, ts = _bn_affine(make_bn_raw(cout))
    return {"pre_scale": s1, "pre_shift": t1,
            "c1": pack_conv(pi.normal((cout, cin, 3, 3)), jnp.zeros((cout,), jnp.float32),
                            post_scale=s2, post_shift=t2),
            "c2": pack_conv(pi.normal((cout, cout, 3, 3)), jnp.zeros((cout,), jnp.float32)),
            "cs": pack_conv(pi.normal((cout, cin, 3, 3)), jnp.zeros((cout,), jnp.float32),
                            post_scale=ss, post_shift=ts)}


def make_smaformer(pi, in_channels=1, n_classes=LITS_NUM_CLASSES):
    f = [16, 32, 64, 128, 256, 512]
    s0, t0 = _bn_affine(make_bn_raw(f[0]))
    P = {}
    P["in_c1"] = pack_conv(pi.normal((f[0], in_channels, 3, 3)),
                           jnp.zeros((f[0],), jnp.float32), post_scale=s0, post_shift=t0)
    P["in_c2"] = pack_conv(pi.normal((f[0], f[0], 3, 3)), jnp.zeros((f[0],), jnp.float32))
    P["in_skip"] = pack_conv(pi.normal((f[0], in_channels, 3, 3)),
                             jnp.zeros((f[0],), jnp.float32))
    P["pe1"] = make_modulator(pi, f[0], f[1])
    P["enc1"] = make_encdec(pi, f[1], 8, 2)
    P["rc1"] = make_resconv(pi, f[1], f[2])
    P["pe2"] = make_modulator(pi, f[2], f[3])
    P["enc2"] = make_encdec(pi, f[3], 8, 2)
    P["rc2"] = make_resconv(pi, f[3], f[4])
    P["pe3"] = make_modulator(pi, f[4], f[5])
    P["enc3"] = make_encdec(pi, f[5], 8, 2)
    P["enc4"] = make_encdec(pi, f[5], 8, 2)
    P["dec1"] = make_encdec(pi, f[5], 8, 2)
    P["ut1"] = pack_convT(pi.normal((f[5], f[4], 2, 2)), jnp.zeros((f[4],), jnp.float32))
    P["dec2"] = make_encdec(pi, f[5], 8, 2)
    P["ut2"] = pack_convT(pi.normal((f[5], f[4], 2, 2)), jnp.zeros((f[4],), jnp.float32))
    P["ut3"] = pack_convT(pi.normal((f[4] + f[3], f[3], 1, 1)), jnp.zeros((f[3],), jnp.float32))
    P["dec3"] = make_encdec(pi, f[3], 8, 2)
    P["ut4"] = pack_convT(pi.normal((f[3], f[2], 2, 2)), jnp.zeros((f[2],), jnp.float32))
    P["ut5"] = pack_convT(pi.normal((f[3], f[2], 2, 2)), jnp.zeros((f[2],), jnp.float32))
    P["dec4"] = make_encdec(pi, f[2], 8, 2)
    P["adjust"] = pack_convT(pi.normal((f[1], f[2], 1, 1)), jnp.zeros((f[2],), jnp.float32))
    P["ut6"] = pack_convT(pi.normal((f[2], f[1], 2, 2)), jnp.zeros((f[1],), jnp.float32))
    P["out1"] = pack_conv(pi.normal((f[0], f[1], 1, 1)), jnp.zeros((f[0],), jnp.float32))
    P["out2"] = pack_conv(pi.normal((n_classes, f[0], 1, 1)),
                          jnp.zeros((n_classes,), jnp.float32))
    return P


# --------------------------------------------------------------------------------------
if __name__ == "__main__":
    key = jax.random.PRNGKey(0)
    # LiTS: 1 input channel.  32x32 keeps every stage's token count a perfect square.
    x = jax.random.normal(jax.random.fold_in(key, 1), (2, 1, 32, 32), dtype=jnp.float32)

    params = make_smaformer(ParamInit(seed=0))
    out = smaformer_forward(params, x)
    out = jax.block_until_ready(out)

    assert out.shape == (2, LITS_NUM_CLASSES, 32, 32), out.shape
    assert bool(jnp.all(jnp.isfinite(out)))
    print("KERNEL_OK")
</pallas_src>

<mosaic_0001>
module attributes {stable_mosaic.version = 11 : i64} {
  func.func @_matmul_kernel(%arg0: i32, %arg1: i32, %arg2: i32, %arg3: memref<256x128xbf16, #tpu.memory_space<vmem>>, %arg4: memref<128x128xbf16, #tpu.memory_space<vmem>>, %arg5: memref<1x128xf32, #tpu.memory_space<vmem>>, %arg6: memref<256x128xf32, #tpu.memory_space<vmem>>, %arg7: memref<256x128xf32, #tpu.memory_space<vmem>>) attributes {dimension_semantics = [#tpu.dimension_semantics<parallel>, #tpu.dimension_semantics<parallel>, #tpu.dimension_semantics<arbitrary>], iteration_bounds = array<i64: 8, 1, 1>, scalar_prefetch = 0 : i64, scratch_operands = 1 : i64, tpu.core_type = #tpu.core_type<tc>, window_params = [{transform_indices = @transform_0, window_bounds = array<i64: 256, 128>}, {transform_indices = @transform_1, window_bounds = array<i64: 128, 128>}, {transform_indices = @transform_2, window_bounds = array<i64: 1, 128>}, {transform_indices = @transform_3, window_bounds = array<i64: 256, 128>}]} {
    %c0_i32 = arith.constant 0 : i32
    %0 = arith.cmpi eq, %arg2, %c0_i32 : i32
    %1 = arith.extui %0 : i1 to i32
    %c0_i32_0 = arith.constant 0 : i32
    %2 = arith.cmpi ne, %1, %c0_i32_0 : i32
    scf.if %2 {
      %cst_10 = arith.constant 0.000000e+00 : f32
      %12 = vector.broadcast %cst_10 : f32 to vector<256x128xf32>
      %c0_11 = arith.constant 0 : index
      %c0_12 = arith.constant 0 : index
      %13 = vector.load %arg7[%c0_11, %c0_12] : memref<256x128xf32, #tpu.memory_space<vmem>>, vector<256x128xf32>
      tpu.vector_store %arg7[%c0_11, %c0_12], %12 {strides = array<i32>} : memref<256x128xf32, #tpu.memory_space<vmem>>, vector<256x128xf32>,
    } else {
    }
    %c0 = arith.constant 0 : index
    %c0_1 = arith.constant 0 : index
    %3 = vector.load %arg7[%c0, %c0_1] : memref<256x128xf32, #tpu.memory_space<vmem>>, vector<256x128xf32>
    %c0_2 = arith.constant 0 : index
    %c0_3 = arith.constant 0 : index
    %4 = vector.load %arg3[%c0_2, %c0_3] : memref<256x128xbf16, #tpu.memory_space<vmem>>, vector<256x128xbf16>
    %c0_4 = arith.constant 0 : index
    %c0_5 = arith.constant 0 : index
    %5 = vector.load %arg4[%c0_4, %c0_5] : memref<128x128xbf16, #tpu.memory_space<vmem>>, vector<128x128xbf16>
    %cst = arith.constant dense<0.000000e+00> : vector<256x128xf32>
    %6 = tpu.matmul %4, %5, %cst {dimension_numbers = #tpu.dot_dimension_numbers<[1], [0], [0], [1], [0, 0, 1, 1], [], []>} : vector<256x128xbf16>, vector<128x128xbf16>, vector<256x128xf32> -> vector<256x128xf32>
    %7 = arith.addf %3, %6 : vector<256x128xf32>
    %c0_6 = arith.constant 0 : index
    %c0_7 = arith.constant 0 : index
    %8 = vector.load %arg7[%c0_6, %c0_7] : memref<256x128xf32, #tpu.memory_space<vmem>>, vector<256x128xf32>
    tpu.vector_store %arg7[%c0_6, %c0_7], %7 {strides = array<i32>} : memref<256x128xf32, #tpu.memory_space<vmem>>, vector<256x128xf32>,
    %c0_i32_8 = arith.constant 0 : i32
    %9 = arith.cmpi eq, %arg2, %c0_i32_8 : i32
    %10 = arith.extui %9 : i1 to i32
    %c0_i32_9 = arith.constant 0 : i32
    %11 = arith.cmpi ne, %10, %c0_i32_9 : i32
    scf.if %11 {
      %c0_10 = arith.constant 0 : index
      %c0_11 = arith.constant 0 : index
      %12 = vector.load %arg7[%c0_10, %c0_11] : memref<256x128xf32, #tpu.memory_space<vmem>>, vector<256x128xf32>
      %c0_12 = arith.constant 0 : index
      %c0_13 = arith.constant 0 : index
      %13 = vector.load %arg5[%c0_12, %c0_13] : memref<1x128xf32, #tpu.memory_space<vmem>>, vector<1x128xf32>
      %14 = vector.broadcast %13 : vector<1x128xf32> to vector<256x128xf32>
      %15 = arith.addf %12, %14 : vector<256x128xf32>
      %cst_14 = arith.constant 0.000000e+00 : f32
      %16 = vector.broadcast %cst_14 : f32 to vector<256x128xf32>
      %17 = arith.maximumf %15, %16 : vector<256x128xf32>
      %c0_15 = arith.constant 0 : index
      %c0_16 = arith.constant 0 : index
      %18 = vector.load %arg6[%c0_15, %c0_16] : memref<256x128xf32, #tpu.memory_space<vmem>>, vector<256x128xf32>
      tpu.vector_store %arg6[%c0_15, %c0_16], %17 {strides = array<i32>} : memref<256x128xf32, #tpu.memory_space<vmem>>, vector<256x128xf32>,
    } else {
    }
    return
  }
  func.func @transform_0(%arg0: i32, %arg1: i32, %arg2: i32) -> (i32, i32) {
    %c0_i32 = arith.constant 0 : i32
    return %arg0, %arg2 : i32, i32
  }
  func.func @transform_1(%arg0: i32, %arg1: i32, %arg2: i32) -> (i32, i32) {
    %c0_i32 = arith.constant 0 : i32
    return %arg2, %arg1 : i32, i32
  }
  func.func @transform_2(%arg0: i32, %arg1: i32, %arg2: i32) -> (i32, i32) {
    %c0_i32 = arith.constant 0 : i32
    %c0_i32_0 = arith.constant 0 : i32
    return %c0_i32, %arg1 : i32, i32
  }
  func.func @transform_3(%arg0: i32, %arg1: i32, %arg2: i32) -> (i32, i32) {
    %c0_i32 = arith.constant 0 : i32
    return %arg0, %arg1 : i32, i32
  }
}

</mosaic_0001>

<bundles_post_ra>
// kernel: tpu_custom_call.1
= control target key start
LH: loop header
LB: loop body
LE: loop exit
PB: predicated region body
PF: predicated region fallthrough
CT: control target
= control target key end

     0   :  { %s1598_s0 = inlined_call_operand.hbm [shape: bf16[2048,128], index: 0, kind: input, shape index: {}]   ;;  %s1599_s1 = inlined_call_operand.hbm [shape: bf16[128,128], index: 1, kind: input, shape index: {}]   ;;  %s1600_s2 = inlined_call_operand.vmem [shape: f32[1,128], index: 2, kind: input, shape index: {}]   ;;  %s1601_s3 = inlined_call_operand.hbm [shape: f32[2048,128], index: 3, kind: output, shape index: {}]  }
   0x1   :  { %1603 = sst [smem:[#allocation12_spill]] %s1599_s1 }
   0x2   :  { %8 = vsyncpa [#allocation4], 0 }
   0x3   :  { %10 = vsyncpa [#allocation4 + $0x1], 0 }
   0x4   :  { %11 = vsyncpa [#allocation7], 0 }
   0x5   :  { %12 = vsyncpa [#allocation5], 0 }
   0x6   :  { %14 = vsyncpa [#allocation5 + $0x1], 0  ;;  %s1354_s12 = smov 0   ;;  %s1356_s13 = smov 0  }
   0x7   :  { %s1358_s14 = smov 0   ;;  %s1360_s15 = smov 0  }
   0x8   :  { %s1362_s16 = smov 0   ;;  %s1364_s17 = smov 0  }
   0x9 LB: > { %s939_s18 = sadd.s32 4294967295, %s1327_s17   ;;  %s940_s19 = sadd.s32 4294967294, %s1327_s17   ;;  %s1327_s17 = sphi %s1364_s17, %s20_s17   ;;  %s1323_s16 = sphi %s1362_s16, %s1617_s16   ;;  %s1319_s15 = sphi %s1360_s15, %s1616_s15   ;;  %s1315_s14 = sphi %s1358_s14, %s1615_s14   ;;  %s1311_s13 = sphi %s1356_s13, %s1614_s13   ;;  %s1307_s12 = sphi %s1354_s12, %s1613_s12  }
   0xa   : > { %p61_p0 = scmp.ne.s32.totalorder %s1311_s13, %s1307_s12  ;;  %p1388_p1 = scmp.eq.s32.totalorder %s939_s18, 0 }
   0xb   : > { %p1392_p2 = scmp.eq.s32.totalorder %s939_s18, 7  ;;  %p147_p3 = scmp.eq.s32.totalorder %s940_s19, 7 }
   0xc   : > { %p1398_p4 = por %p1388_p1, %p61_p0  ;;  %p941_p5 = scmp.ge.s32.totalorder %s1327_s17, 1 }
   0xd   : > { %p1403_p6 = por %p147_p3, %p61_p0  ;;  %p154_p7 = scmp.lt.s32.totalorder %s1327_s17, 9 }
   0xe   : > { %s1608_s1 = sld [smem:[#allocation12_spill]]  ;;  %s1329_s28 = smov [#allocation6]  }
   0xf   : > { %p1411_p8 = pnand %p941_p5, %p154_p7  ;;  %s171_s29 = sshll.u32 %s1329_s28, 4  ;;  %s172_s29 = int_to_ptr.vmem [resolvable:$true] %s171_s29 }
  0x10   : > { %s1602_s30 = smov 64   ;;  %s1331_s4 = smov 4  }
  0x11   : > { %p1111_p9 = pneg %p1411_p8  ;;  %s39_s5 = sadd.s32 1, %s1323_s16 }
  0x12   : > { %p41_p11 = scmp.ge.s32.totalorder %s39_s5, 8  ;;  %s48_s6 = sadd.s32 1, %s1315_s14 }
  0x13   : > { %p1112_p10 = pnand %p1111_p9, %p1388_p1  ;;  %p55_p12 = scmp.ne.s32.totalorder %s1315_s14, %s1311_s13 }
  0x14   : > { %s169_s26 = sshll.u32 %s1608_s1, 4  ;;  %p56_p13 = scmp.eq.s32.totalorder %s1327_s17, 0  ;;  %s170_s26 = int_to_ptr.hbm [resolvable:$true] %s169_s26 }
  0x15   : > { %1114 = dma.hbm_to_vmem [thread:$0]  (!%p1112_p10), %s170_s26, 1024, %s172_s29, [#allocation7], %s1602_s30, %s1602_s30, %s1331_s4  }
  0x16   : > { %s1619_s5 = smov (%p41_p11, %s39_s5), 0  ;;  %p1429_p0 = por %p56_p13, %p55_p12 }
  0x17   : > { %p1435_p3 = por %p1392_p2, %p55_p12  ;;  %s43_s9 = ssub.s32 %s1323_s16, %s1619_s5 }
  0x18   : > { %p1124_p5 = scmp.lt.s32.totalorder %s1327_s17, 8  ;;  %p46_p7 = scmp.eq.s32.totalorder %s43_s9, 0 }
  0x19   : > { %s191_s10 = sand.u32 1, %s1315_s14   ;;  %s1053_s19 = sshll.u32 %s1323_s16, 7 }
  0x1a   : > { %s945_s11 = sshll.u32 %s191_s10, 7  ;;  %s201_s26 = scalar_lea.hbm %s1598_s0, %s1053_s19 }
  0x1b   : > { %s1444_s18 = scalar_select %p46_p7, %s1315_s14, %s48_s6  }
  0x1c   : > { %s195_s28 = scalar_lea.vmem [#allocation3], %s945_s11  ;;  %s202_s21 = sshll.u32 %s201_s26, 4  ;;  %s203_s21 = int_to_ptr.hbm [resolvable:$true] %s202_s21 }
  0x1d   : > { %s204_s29 = sshll.u32 %s195_s28, 4  ;;  %p1116_p2 = pnand %p1124_p5, %p1429_p0  ;;  %s205_s29 = int_to_ptr.vmem [resolvable:$true] %s204_s29 }
  0x1e   : > { %s192_s30 = scalar_lea.sflag [#allocation4], %s191_s10  ;;  %s1612_s1 = smov 64  }
  0x1f   : > { %1118 = dma.hbm_to_vmem [thread:$0]  (!%p1116_p2), %s203_s21, 2048, %s205_s29, %s192_s30, %s1612_s1, %s1612_s1, %s1331_s4  }
  0x20   : > { %216 = sbr.rel (%p1411_p8) target bundleno = 270 (0x10e), region = 32  ;;  %s1458_s6 = sand.u32 (!%p1411_p8), 1, %s1311_s13  }
  0x21   : > { %s949_s9 = sshll.u32 (!%p1411_p8), %s1458_s6, 7  ;;  %s219_s11 = scalar_lea.sflag (!%p1411_p8), [#allocation4], %s1458_s6 }
  0x22   : > { %s1462_s19 = scalar_lea.vmem (!%p1411_p8), [#allocation3], %s949_s9 }
  0x25   : > { %1294 = dma.done.wait (%p1398_p4), %s219_s11, 2048  }
  0x26   : > { %1296 = vsyncadd (%p1398_p4), %s219_s11, 4294965248 }
  0x27   : > { %1298 = dma.done.wait (%p1388_p1), [#allocation7], 1024  }
  0x28   : > { %1300 = vsyncadd (%p1388_p1), [#allocation7], 4294966272  ;;  %v1077_v0 = vld [vmem:[#allocation6 + $0x38] sm:$0xff]  ;;  %v1076_v1 = vld [vmem:[#allocation6 + $0x30] sm:$0xff]  ;;  %s951_s22 = sshll.u32 %s1458_s6, 8  ;;  %s1078_s30 = sshll.u32 %s1319_s15, 8 }
  0x29   : > { %520 = vmatpush.bf16.msra.mxu0 %v1077_v0  ;;  %1079 = vmatpush.bf16.msra.mxu1 %v1077_v0  ;;  %v1075_v2 = vld [vmem:[#allocation6 + $0x28] sm:$0xff]  ;;  %v1074_v3 = vld [vmem:[#allocation6 + $0x20] sm:$0xff]  ;;  %v1073_v4 = vld [vmem:[#allocation6 + $0x18] sm:$0xff]  ;;  %s1496_s27 = scalar_lea.vmem [#allocation8], %s951_s22  ;;  %s821_s10 = scalar_lea.hbm %s1601_s3, %s1078_s30 }
  0x2a   : > { %1080 = vmatpush.bf16.msra.mxu2 %v1077_v0  ;;  %1081 = vmatpush.bf16.msra.mxu3 %v1077_v0  ;;  %v1072_v5 = vld [vmem:[#allocation6 + $0x10] sm:$0xff]  ;;  %v1071_v6 = vld [vmem:[#allocation6 + $0x8] sm:$0xff]  ;;  %v1070_v7 = vld [vmem:[#allocation6] sm:$0xff]  ;;  %s822_s24 = sshll.u32 %s1496_s27, 4  ;;  %s824_s15 = sshll.u32 %s821_s10, 4  ;;  %s823_s24 = int_to_ptr.vmem [resolvable:$true] %s822_s24  ;;  %s825_s15 = int_to_ptr.hbm [resolvable:$true] %s824_s15 }
  0x2b   : > { %v1054_v8 = vld [vmem:[%s1462_s19] sm:$0xff]  ;;  %v1055_v12 = vld [vmem:[%s1462_s19 + $0x8] sm:$0xff]  ;;  %v1056_v16 = vld [vmem:[%s1462_s19 + $0x10] sm:$0xff]  ;;  %s809_s25 = scalar_lea.sflag [#allocation5], %s1458_s6  ;;  %s1255_s26 = sshra.s32 %s825_s15, 4  ;;  %s1256_s26 = int_to_ptr.hbm [resolvable:$true] %s1255_s26 }
  0x2c   : > { %v1058_v9 = vld [vmem:[%s1462_s19 + $0x20] sm:$0xff]  ;;  %v1059_v13 = vld [vmem:[%s1462_s19 + $0x28] sm:$0xff]  ;;  %v1060_v17 = vld [vmem:[%s1462_s19 + $0x30] sm:$0xff]  ;;  %s1257_s28 = scalar_lea.hbm %s1256_s26, 256  ;;  %s1261_s9 = scalar_lea.hbm %s1601_s3, 2048 }
  0x2d   : > { %521 = vmatpush.bf16.msra.mxu0 %v1076_v1  ;;  %1082 = vmatpush.bf16.msra.mxu1 %v1076_v1  ;;  %v1062_v10 = vld [vmem:[%s1462_s19 + $0x40] sm:$0xff]  ;;  %v1063_v14 = vld [vmem:[%s1462_s19 + $0x48] sm:$0xff]  ;;  %v1064_v18 = vld [vmem:[%s1462_s19 + $0x50] sm:$0xff]  ;;  %p1258_p1 = scmp.ne.s32.totalorder %s1256_s26, %s1257_s28  ;;  %p1262_p9 = scmp.lt.s32.totalorder %s1256_s26, %s1601_s3 }
  0x2e   : > { %1083 = vmatpush.bf16.msra.mxu2 %v1076_v1  ;;  %1084 = vmatpush.bf16.msra.mxu3 %v1076_v1  ;;  %v1066_v11 = vld [vmem:[%s1462_s19 + $0x60] sm:$0xff]  ;;  %v1067_v15 = vld [vmem:[%s1462_s19 + $0x68] sm:$0xff]  ;;  %v1068_v19 = vld [vmem:[%s1462_s19 + $0x70] sm:$0xff]  ;;  %p1263_p10 = scmp.lt.s32.totalorder %s1261_s9, %s1257_s28 }
  0x2f   : > { %v1057_v20 = vld [vmem:[%s1462_s19 + $0x18] sm:$0xff]  ;;  %v1491_v24 = vld [vmem:[%s1600_s2] ss:$0 sm:$0xff]  ;;  %p1259_p4 = pnand %p1258_p1, %p1435_p3 }
  0x30   : > { %v1061_v21 = vld [vmem:[%s1462_s19 + $0x38] sm:$0xff]  ;;  %p1264_p11 = por %p1263_p10, %p1262_p9 }
  0x31   : > { %522 = vmatpush.bf16.msra.mxu0 %v1075_v2  ;;  %1085 = vmatpush.bf16.msra.mxu1 %v1075_v2  ;;  %v1065_v22 = vld [vmem:[%s1462_s19 + $0x58] sm:$0xff]  ;;  %p1260_p8 = pneg %p1259_p4 }
  0x32   : > { %1086 = vmatpush.bf16.msra.mxu2 %v1075_v2  ;;  %1087 = vmatpush.bf16.msra.mxu3 %v1075_v2  ;;  %v1069_v23 = vld [vmem:[%s1462_s19 + $0x78] sm:$0xff] }
  0x33   : > { %p1265_p12 = pnand %p1264_p11, %p1260_p8 }
  0x35   : > { %523 = vmatpush.bf16.msra.mxu0 %v1074_v3  ;;  %1088 = vmatpush.bf16.msra.mxu1 %v1074_v3 }
  0x36   : > { %1089 = vmatpush.bf16.msra.mxu2 %v1074_v3  ;;  %1090 = vmatpush.bf16.msra.mxu3 %v1074_v3 }
  0x39   : > { %524 = vmatpush.bf16.msra.mxu0 %v1073_v4  ;;  %1091 = vmatpush.bf16.msra.mxu1 %v1073_v4 }
  0x3a   : > { %1092 = vmatpush.bf16.msra.mxu2 %v1073_v4  ;;  %1093 = vmatpush.bf16.msra.mxu3 %v1073_v4 }
  0x3d   : > { %525 = vmatpush.bf16.msra.mxu0 %v1072_v5  ;;  %1094 = vmatpush.bf16.msra.mxu1 %v1072_v5 }
  0x3e   : > { %1095 = vmatpush.bf16.msra.mxu2 %v1072_v5  ;;  %1096 = vmatpush.bf16.msra.mxu3 %v1072_v5 }
  0x41   : > { %526 = vmatpush.bf16.msra.mxu0 %v1071_v6  ;;  %1097 = vmatpush.bf16.msra.mxu1 %v1071_v6 }
  0x42   : > { %1098 = vmatpush.bf16.msra.mxu2 %v1071_v6  ;;  %1099 = vmatpush.bf16.msra.mxu3 %v1071_v6 }
  0x45   : > { %527 = vmatpush.bf16.msra.mxu0 %v1070_v7  ;;  %1100 = vmatpush.bf16.msra.mxu1 %v1070_v7 }
  0x46   : > { %1101 = vmatpush.bf16.msra.mxu2 %v1070_v7  ;;  %1102 = vmatpush.bf16.msra.mxu3 %v1070_v7 }
  0x48   : > { %528 = vmatmul.bf16.vlgmr.msra.gmra.mxu0 %v1054_v8  ;;  %548 = vmatmul.bf16.vlgmr.msra.gmra.mxu1 %v1058_v9 }
  0x49   : > { %568 = vmatmul.bf16.vlgmr.msra.gmra.mxu2 %v1062_v10  ;;  %588 = vmatmul.bf16.vlgmr.msra.gmra.mxu3 %v1066_v11 }
  0x58   : > { %533 = vmatmul.bf16.gmra.mxu0 %v1055_v12  ;;  %553 = vmatmul.bf16.gmra.mxu1 %v1059_v13 }
  0x59   : > { %573 = vmatmul.bf16.gmra.mxu2 %v1063_v14  ;;  %593 = vmatmul.bf16.gmra.mxu3 %v1067_v15 }
  0x68   : > { %538 = vmatmul.bf16.gmra.mxu0 %v1056_v16  ;;  %558 = vmatmul.bf16.gmra.mxu1 %v1060_v17 }
  0x69   : > { %578 = vmatmul.bf16.gmra.mxu2 %v1064_v18  ;;  %598 = vmatmul.bf16.gmra.mxu3 %v1068_v19 }
  0x78   : > { %543 = vmatmul.bf16.gmra.mxu0 %v1057_v20  ;;  %563 = vmatmul.bf16.gmra.mxu1 %v1061_v21 }
  0x79   : > { %583 = vmatmul.bf16.gmra.mxu2 %v1065_v22  ;;  %603 = vmatmul.bf16.gmra.mxu3 %v1069_v23 }
  0xc5   : > { %v529_v25 = vpop.f32.mrf.mxu0  ;;  %v549_v26 = vpop.f32.mrf.mxu1 }
  0xc6   : > { %v712_v27 = vadd.f32 %v1491_v24, %v529_v25  ;;  %v720_v28 = vadd.f32 %v1491_v24, %v549_v26 }
  0xc8   : > { %v744_v29 = vmax.f32 %v712_v27, 0.0  ;;  %v752_v30 = vmax.f32 %v720_v28, 0.0 }
  0xca   : > { %776 = vst [vmem:[%s1496_s27] sm:$0xff] %v744_v29 }
  0xcb   : > { %784 = vst [vmem:[%s1496_s27 + $0x40] sm:$0xff] %v752_v30 }
  0xcc   : > { %v569_v31 = vpop.f32.mrf.mxu2  ;;  %v589_v32 = vpop.f32.mrf.mxu3 }
  0xcd   : > { %v728_v33 = vadd.f32 %v1491_v24, %v569_v31  ;;  %v736_v34 = vadd.f32 %v1491_v24, %v589_v32  ;;  %v531_v35 = vpop.f32.mrf.mxu0  ;;  %v551_v36 = vpop.f32.mrf.mxu1 }
  0xce   : > { %v713_v37 = vadd.f32 %v1491_v24, %v531_v35  ;;  %v721_v38 = vadd.f32 %v1491_v24, %v551_v36 }
  0xcf   : > { %v760_v39 = vmax.f32 %v728_v33, 0.0  ;;  %v768_v40 = vmax.f32 %v736_v34, 0.0 }
  0xd0   : > { %v745_v41 = vmax.f32 %v713_v37, 0.0  ;;  %v753_v42 = vmax.f32 %v721_v38, 0.0 }
  0xd1   : > { %792 = vst [vmem:[%s1496_s27 + $0x80] sm:$0xff] %v760_v39 }
  0xd2   : > { %800 = vst [vmem:[%s1496_s27 + $0xc0] sm:$0xff] %v768_v40 }
  0xd3   : > { %777 = vst [vmem:[%s1496_s27 + $0x8] sm:$0xff] %v745_v41 }
  0xd4   : > { %785 = vst [vmem:[%s1496_s27 + $0x48] sm:$0xff] %v753_v42  ;;  %v571_v43 = vpop.f32.mrf.mxu2  ;;  %v591_v44 = vpop.f32.mrf.mxu3 }
  0xd5   : > { %v729_v45 = vadd.f32 %v1491_v24, %v571_v43  ;;  %v737_v46 = vadd.f32 %v1491_v24, %v591_v44  ;;  %v534_v47 = vpop.f32.mrf.mxu0  ;;  %v554_v48 = vpop.f32.mrf.mxu1 }
  0xd6   : > { %v714_v49 = vadd.f32 %v1491_v24, %v534_v47  ;;  %v722_v50 = vadd.f32 %v1491_v24, %v554_v48 }
  0xd7   : > { %v761_v51 = vmax.f32 %v729_v45, 0.0  ;;  %v769_v52 = vmax.f32 %v737_v46, 0.0 }
  0xd8   : > { %v746_v53 = vmax.f32 %v714_v49, 0.0  ;;  %v754_v54 = vmax.f32 %v722_v50, 0.0 }
  0xd9   : > { %793 = vst [vmem:[%s1496_s27 + $0x88] sm:$0xff] %v761_v51 }
  0xda   : > { %801 = vst [vmem:[%s1496_s27 + $0xc8] sm:$0xff] %v769_v52 }
  0xdb   : > { %778 = vst [vmem:[%s1496_s27 + $0x10] sm:$0xff] %v746_v53 }
  0xdc   : > { %786 = vst [vmem:[%s1496_s27 + $0x50] sm:$0xff] %v754_v54  ;;  %v574_v55 = vpop.f32.mrf.mxu2  ;;  %v594_v56 = vpop.f32.mrf.mxu3 }
  0xdd   : > { %v730_v57 = vadd.f32 %v1491_v24, %v574_v55  ;;  %v738_v58 = vadd.f32 %v1491_v24, %v594_v56  ;;  %v536_v59 = vpop.f32.mrf.mxu0  ;;  %v556_v60 = vpop.f32.mrf.mxu1 }
  0xde   : > { %v715_v61 = vadd.f32 %v1491_v24, %v536_v59  ;;  %v723_v62 = vadd.f32 %v1491_v24, %v556_v60 }
  0xdf   : > { %v762_v63 = vmax.f32 %v730_v57, 0.0  ;;  %v770_v0 = vmax.f32 %v738_v58, 0.0 }
  0xe0   : > { %v747_v1 = vmax.f32 %v715_v61, 0.0  ;;  %v755_v2 = vmax.f32 %v723_v62, 0.0 }
  0xe1   : > { %794 = vst [vmem:[%s1496_s27 + $0x90] sm:$0xff] %v762_v63 }
  0xe2   : > { %802 = vst [vmem:[%s1496_s27 + $0xd0] sm:$0xff] %v770_v0 }
  0xe3   : > { %779 = vst [vmem:[%s1496_s27 + $0x18] sm:$0xff] %v747_v1 }
  0xe4   : > { %787 = vst [vmem:[%s1496_s27 + $0x58] sm:$0xff] %v755_v2  ;;  %v576_v3 = vpop.f32.mrf.mxu2  ;;  %v596_v4 = vpop.f32.mrf.mxu3 }
  0xe5   : > { %v731_v5 = vadd.f32 %v1491_v24, %v576_v3  ;;  %v739_v6 = vadd.f32 %v1491_v24, %v596_v4  ;;  %v539_v7 = vpop.f32.mrf.mxu0  ;;  %v559_v8 = vpop.f32.mrf.mxu1 }
  0xe6   : > { %v716_v9 = vadd.f32 %v1491_v24, %v539_v7  ;;  %v724_v10 = vadd.f32 %v1491_v24, %v559_v8 }
  0xe7   : > { %v763_v11 = vmax.f32 %v731_v5, 0.0  ;;  %v771_v12 = vmax.f32 %v739_v6, 0.0 }
  0xe8   : > { %v748_v13 = vmax.f32 %v716_v9, 0.0  ;;  %v756_v14 = vmax.f32 %v724_v10, 0.0 }
  0xe9   : > { %795 = vst [vmem:[%s1496_s27 + $0x98] sm:$0xff] %v763_v11 }
  0xea   : > { %803 = vst [vmem:[%s1496_s27 + $0xd8] sm:$0xff] %v771_v12 }
  0xeb   : > { %780 = vst [vmem:[%s1496_s27 + $0x20] sm:$0xff] %v748_v13 }
  0xec   : > { %788 = vst [vmem:[%s1496_s27 + $0x60] sm:$0xff] %v756_v14  ;;  %v579_v15 = vpop.f32.mrf.mxu2  ;;  %v599_v16 = vpop.f32.mrf.mxu3 }
  0xed   : > { %v732_v17 = vadd.f32 %v1491_v24, %v579_v15  ;;  %v740_v18 = vadd.f32 %v1491_v24, %v599_v16  ;;  %v541_v19 = vpop.f32.mrf.mxu0  ;;  %v561_v20 = vpop.f32.mrf.mxu1 }
  0xee   : > { %v717_v21 = vadd.f32 %v1491_v24, %v541_v19  ;;  %v725_v22 = vadd.f32 %v1491_v24, %v561_v20 }
  0xef   : > { %v764_v23 = vmax.f32 %v732_v17, 0.0  ;;  %v772_v25 = vmax.f32 %v740_v18, 0.0 }
  0xf0   : > { %v749_v26 = vmax.f32 %v717_v21, 0.0  ;;  %v757_v27 = vmax.f32 %v725_v22, 0.0 }
  0xf1   : > { %796 = vst [vmem:[%s1496_s27 + $0xa0] sm:$0xff] %v764_v23 }
  0xf2   : > { %804 = vst [vmem:[%s1496_s27 + $0xe0] sm:$0xff] %v772_v25 }
  0xf3   : > { %781 = vst [vmem:[%s1496_s27 + $0x28] sm:$0xff] %v749_v26 }
  0xf4   : > { %789 = vst [vmem:[%s1496_s27 + $0x68] sm:$0xff] %v757_v27  ;;  %v581_v28 = vpop.f32.mrf.mxu2  ;;  %v601_v29 = vpop.f32.mrf.mxu3 }
  0xf5   : > { %v733_v30 = vadd.f32 %v1491_v24, %v581_v28  ;;  %v741_v31 = vadd.f32 %v1491_v24, %v601_v29  ;;  %v544_v32 = vpop.f32.mrf.mxu0  ;;  %v564_v33 = vpop.f32.mrf.mxu1 }
  0xf6   : > { %v718_v34 = vadd.f32 %v1491_v24, %v544_v32  ;;  %v726_v35 = vadd.f32 %v1491_v24, %v564_v33 }
  0xf7   : > { %v765_v36 = vmax.f32 %v733_v30, 0.0  ;;  %v773_v37 = vmax.f32 %v741_v31, 0.0 }
  0xf8   : > { %v750_v38 = vmax.f32 %v718_v34, 0.0  ;;  %v758_v39 = vmax.f32 %v726_v35, 0.0 }
  0xf9   : > { %797 = vst [vmem:[%s1496_s27 + $0xa8] sm:$0xff] %v765_v36 }
  0xfa   : > { %805 = vst [vmem:[%s1496_s27 + $0xe8] sm:$0xff] %v773_v37 }
  0xfb   : > { %782 = vst [vmem:[%s1496_s27 + $0x30] sm:$0xff] %v750_v38 }
  0xfc   : > { %790 = vst [vmem:[%s1496_s27 + $0x70] sm:$0xff] %v758_v39  ;;  %v584_v40 = vpop.f32.mrf.mxu2  ;;  %v604_v41 = vpop.f32.mrf.mxu3 }
  0xfd   : > { %v734_v42 = vadd.f32 %v1491_v24, %v584_v40  ;;  %v742_v43 = vadd.f32 %v1491_v24, %v604_v41  ;;  %v546_v44 = vpop.f32.mrf.mxu0  ;;  %v566_v45 = vpop.f32.mrf.mxu1 }
  0xfe   : > { %v719_v46 = vadd.f32 %v1491_v24, %v546_v44  ;;  %v727_v47 = vadd.f32 %v1491_v24, %v566_v45 }
  0xff   : > { %v766_v48 = vmax.f32 %v734_v42, 0.0  ;;  %v774_v49 = vmax.f32 %v742_v43, 0.0 }
 0x100   : > { %v751_v50 = vmax.f32 %v719_v46, 0.0  ;;  %v759_v51 = vmax.f32 %v727_v47, 0.0 }
 0x101   : > { %798 = vst [vmem:[%s1496_s27 + $0xb0] sm:$0xff] %v766_v48 }
 0x102   : > { %806 = vst [vmem:[%s1496_s27 + $0xf0] sm:$0xff] %v774_v49 }
 0x103   : > { %783 = vst [vmem:[%s1496_s27 + $0x38] sm:$0xff] %v751_v50 }
 0x104   : > { %791 = vst [vmem:[%s1496_s27 + $0x78] sm:$0xff] %v759_v51  ;;  %v586_v52 = vpop.f32.mrf.mxu2  ;;  %v606_v53 = vpop.f32.mrf.mxu3 }
 0x105   : > { %v735_v54 = vadd.f32 %v1491_v24, %v586_v52  ;;  %v743_v55 = vadd.f32 %v1491_v24, %v606_v53 }
 0x107   : > { %v767_v56 = vmax.f32 %v735_v54, 0.0  ;;  %v775_v57 = vmax.f32 %v743_v55, 0.0 }
 0x109   : > { %799 = vst [vmem:[%s1496_s27 + $0xb8] sm:$0xff] %v767_v56 }
 0x10a   : > { %807 = vst [vmem:[%s1496_s27 + $0xf8] sm:$0xff] %v775_v57 }
 0x10b   : > { %1268 = shalt.err (!%p1265_p12)
}
 0x10c   : > { %s1332_s6 = smov 128   ;;  %s1333_s1 = smov 8  }
 0x10d   : > { %1109 = dma.vmem_to_hbm [thread:$0]  (%p1435_p3), %s823_s24, 4096, %s825_s15, %s809_s25, %s1332_s6, %s1332_s6, %s1333_s1  }
 0x10e PF: > { %p1126_p13 = scmp.ge.s32.totalorder %s1327_s17, 2  ;;  %s839_s20 = sand.u32 1, %s1307_s12  }
 0x10f   : > { %s840_s22 = scalar_lea.sflag [#allocation5], %s839_s20 }
 0x110   : > { %p1120_p0 = pnand %p1126_p13, %p1403_p6 }
 0x112   : > { %p1121_p5 = pneg %p1120_p0 }
 0x114   : > { %1302 = dma.done.wait (%p1121_p5), %s840_s22, 4096  }
 0x115   : > { %1304 = vsyncadd (%p1121_p5), %s840_s22, 4294963200  ;;  %s20_s17 = sadd.s32 1, %s1327_s17   ;;  %s1613_s12 = smov %s1311_s13 }
 0x116   : > { %p17_p7 = scmp.ge.s32.totalorder %s20_s17, 10   ;;  %s1614_s13 = smov %s1315_s14 }
 0x117   : > { %s1615_s14 = smov %s1444_s18  ;;  %s1616_s15 = smov %s1323_s16 }
 0x118   : > { %s1617_s16 = smov %s1619_s5  ;;  %19 = sbr.rel (!%p17_p7) target bundleno = 9 (0x9), region = 93 }
 0x11d   :  { %846 = vsyncpa [#allocation4], 1 }
 0x11e   :  { %848 = vsyncpa [#allocation4 + $0x1], 1 }
 0x11f   :  { %849 = vsyncpa [#allocation7], 1 }
 0x120   :  { %850 = vsyncpa [#allocation5], 1 }
 0x121   :  { %852 = vsyncpa [#allocation5 + $0x1], 1 }

</bundles_post_ra>
